<compile_context>
chip_gen: v7x
topology: tpu7x:2x2x1
jax: 0.10.0
libtpu: 0.0.40
codegen_flags: <defaults>
</compile_context>

<pallas_src>
import functools

import jax
import jax.numpy as jnp
import numpy as np
from jax.experimental import pallas as pl
from jax.experimental.pallas import tpu as pltpu

_LANE = 128


def _softplus(x):
    # Numerically stable, single-exp softplus: max(x, 0) + log1p(exp(-|x|))
    return jnp.maximum(x, 0.0) + jnp.log1p(jnp.exp(-jnp.abs(x)))


def _policy_kernel(xT_ref, w1_ref, b1_ref, wh_ref, bh_ref,
                   muT_ref, stdT_ref, *, action_dim):
    # All operands are (features, batch_tile): batch on the lane axis.
    xT = xT_ref[...]                                                    # (S, tb)

    # fc1 + ReLU (MXU matmul, f32 accumulation)
    h = jnp.dot(w1_ref[...], xT, preferred_element_type=jnp.float32)   # (H, tb)
    h = jnp.maximum(h + b1_ref[...], 0.0)

    # Fused heads: one matmul produces [mu_pre ; std_pre] stacked on sublanes.
    pre = jnp.dot(wh_ref[...], h, preferred_element_type=jnp.float32)  # (2A, tb)
    pre = pre + bh_ref[...]

    # Cheap sublane split of the fused-head result, per-head nonlinearities.
    mu_pre = pre[:action_dim, :]
    std_pre = pre[action_dim:, :]
    muT_ref[...] = (2.0 * jnp.tanh(mu_pre)).astype(muT_ref.dtype)
    stdT_ref[...] = _softplus(std_pre).astype(stdT_ref.dtype)


def fuse_policy_params(w1, b1, wmu, bmu, wstd, bstd):
    """One-time parameter prep (hoisted out of the per-call path).

    All weights are in PyTorch (out_features, in_features) layout, biases 1-D.
    Returns (w1, b1_2d, w_heads, b_heads) ready for policy_net_continuous.
    """
    w_heads = jnp.concatenate([wmu, wstd], axis=0)                  # (2A, H)
    b_heads = jnp.concatenate([bmu, bstd], axis=0).reshape(-1, 1)   # (2A, 1)
    return w1, b1.reshape(-1, 1), w_heads, b_heads


def _choose_tb(batch, block_b):
    # Batch tile on the lane axis must be a multiple of 128 when tiled,
    # otherwise the full batch.  Aim for >= 2 grid steps (v7x megacore).
    half = ((-(-batch // 2)) + _LANE - 1) // _LANE * _LANE   # ceil(B/2) -> x128
    tb = min(block_b, half)
    return batch if tb >= batch else tb


def policy_net_continuous(x, w1, b1, w_heads, b_heads, *, block_b=8192):
    """x: (B, state_dim) f32 -> (mu, std), each (B, action_dim) f32.

    w1: (hidden_dim, state_dim), b1: (hidden_dim, 1),
    w_heads: (2*action_dim, hidden_dim), b_heads: (2*action_dim, 1)
    (use fuse_policy_params once to build w_heads / b_heads).
    """
    B, state_dim = x.shape
    hidden_dim = w1.shape[0]
    action_dim = w_heads.shape[0] // 2

    tb = _choose_tb(B, block_b)
    grid = (pl.cdiv(B, tb),)   # ragged boundary block handled by Pallas masking

    # Transpose x once so the batch occupies the lane axis inside the kernel.
    # (state_dim rows only -> tiny.)  Output is produced transposed and flipped
    # back here to keep the module's (B, action_dim) interface.
    xT = x.T                                                        # (S, B)

    kernel = functools.partial(_policy_kernel, action_dim=action_dim)

    muT, stdT = pl.pallas_call(
        kernel,
        out_shape=(jax.ShapeDtypeStruct((action_dim, B), jnp.float32),
                   jax.ShapeDtypeStruct((action_dim, B), jnp.float32)),
        grid=grid,
        in_specs=[
            # activations streamed over batch lanes
            pl.BlockSpec((state_dim, tb), lambda i: (0, i)),
            # weights / biases resident in VMEM (same block every step)
            pl.BlockSpec((hidden_dim, state_dim), lambda i: (0, 0)),
            pl.BlockSpec((hidden_dim, 1), lambda i: (0, 0)),
            pl.BlockSpec((2 * action_dim, hidden_dim), lambda i: (0, 0)),
            pl.BlockSpec((2 * action_dim, 1), lambda i: (0, 0)),
        ],
        out_specs=(
            pl.BlockSpec((action_dim, tb), lambda i: (0, i)),
            pl.BlockSpec((action_dim, tb), lambda i: (0, i)),
        ),
        compiler_params=pltpu.CompilerParams(
            dimension_semantics=("parallel",)),
    )(xT, w1, b1, w_heads, b_heads)

    return muT.T, stdT.T


def _reference(x, w1, b1, wmu, bmu, wstd, bstd):
    hi = jax.lax.Precision.HIGHEST
    h = jax.nn.relu(jnp.dot(x, w1.T, precision=hi) + b1)
    mu = 2.0 * jnp.tanh(jnp.dot(h, wmu.T, precision=hi) + bmu)
    std = jax.nn.softplus(jnp.dot(h, wstd.T, precision=hi) + bstd)
    return mu, std


if __name__ == "__main__":
    # Small shapes consistent with the module's forward.
    batch, state_dim, hidden_dim, action_dim = 2, 4, 32, 2

    key = jax.random.PRNGKey(0)
    k = jax.random.split(key, 7)
    # Deterministic synthetic parameters in PyTorch (out, in) layout.
    x    = jax.random.normal(k[0], (batch, state_dim), jnp.float32)
    w1   = jax.random.normal(k[1], (hidden_dim, state_dim), jnp.float32) * (1.0 / np.sqrt(state_dim))
    b1   = jax.random.normal(k[2], (hidden_dim,), jnp.float32) * 0.01
    wmu  = jax.random.normal(k[3], (action_dim, hidden_dim), jnp.float32) * (1.0 / np.sqrt(hidden_dim))
    bmu  = jax.random.normal(k[4], (action_dim,), jnp.float32) * 0.01
    wstd = jax.random.normal(k[5], (action_dim, hidden_dim), jnp.float32) * (1.0 / np.sqrt(hidden_dim))
    bstd = jax.random.normal(k[6], (action_dim,), jnp.float32) * 0.01

    # One-time head fusion (hoisted out of the per-call path).
    fused = fuse_policy_params(w1, b1, wmu, bmu, wstd, bstd)

    fwd = jax.jit(policy_net_continuous)

    mu, std = fwd(x, *fused)
    jax.block_until_ready((mu, std))

    mu_ref, std_ref = _reference(x, w1, b1, wmu, bmu, wstd, bstd)
    assert mu.shape == (batch, action_dim) and std.shape == (batch, action_dim)
    np.testing.assert_allclose(np.asarray(mu), np.asarray(mu_ref), rtol=2e-5, atol=2e-5)
    np.testing.assert_allclose(np.asarray(std), np.asarray(std_ref), rtol=2e-5, atol=2e-5)

    # Also exercise the multi-block path with a ragged boundary block
    # (B = 1050 -> tb = 640, grid = (2,), second block only partially in-bounds).
    big_b = 1050
    xb = jax.random.normal(jax.random.PRNGKey(1), (big_b, state_dim), jnp.float32)
    mu_b, std_b = fwd(xb, *fused)
    jax.block_until_ready((mu_b, std_b))
    mu_br, std_br = _reference(xb, w1, b1, wmu, bmu, wstd, bstd)
    np.testing.assert_allclose(np.asarray(mu_b), np.asarray(mu_br), rtol=2e-5, atol=2e-5)
    np.testing.assert_allclose(np.asarray(std_b), np.asarray(std_br), rtol=2e-5, atol=2e-5)

    print("KERNEL_OK")
</pallas_src>

<mosaic_0001>
module attributes {stable_mosaic.version = 11 : i64} {
  func.func @_policy_kernel(%arg0: i32, %arg1: memref<4x2xf32, #tpu.memory_space<vmem>>, %arg2: memref<32x4xf32, #tpu.memory_space<vmem>>, %arg3: memref<32x1xf32, #tpu.memory_space<vmem>>, %arg4: memref<4x32xf32, #tpu.memory_space<vmem>>, %arg5: memref<4x1xf32, #tpu.memory_space<vmem>>, %arg6: memref<2x2xf32, #tpu.memory_space<vmem>>, %arg7: memref<2x2xf32, #tpu.memory_space<vmem>>) attributes {dimension_semantics = [#tpu.dimension_semantics<parallel>], iteration_bounds = array<i64: 1>, scalar_prefetch = 0 : i64, scratch_operands = 0 : i64, tpu.core_type = #tpu.core_type<tc>, window_params = [{transform_indices = @transform_0, window_bounds = array<i64: 4, 2>}, {pipeline_mode = #tpu.pipeline_mode<synchronous>, transform_indices = @transform_1, window_bounds = array<i64: 32, 4>}, {pipeline_mode = #tpu.pipeline_mode<synchronous>, transform_indices = @transform_2, window_bounds = array<i64: 32, 1>}, {pipeline_mode = #tpu.pipeline_mode<synchronous>, transform_indices = @transform_3, window_bounds = array<i64: 4, 32>}, {pipeline_mode = #tpu.pipeline_mode<synchronous>, transform_indices = @transform_4, window_bounds = array<i64: 4, 1>}, {transform_indices = @transform_5, window_bounds = array<i64: 2, 2>}, {transform_indices = @transform_6, window_bounds = array<i64: 2, 2>}]} {
    %c0 = arith.constant 0 : index
    %c0_0 = arith.constant 0 : index
    %0 = vector.load %arg1[%c0, %c0_0] : memref<4x2xf32, #tpu.memory_space<vmem>>, vector<4x2xf32>
    %c0_1 = arith.constant 0 : index
    %c0_2 = arith.constant 0 : index
    %1 = vector.load %arg2[%c0_1, %c0_2] : memref<32x4xf32, #tpu.memory_space<vmem>>, vector<32x4xf32>
    %cst = arith.constant dense<0.000000e+00> : vector<32x2xf32>
    %2 = tpu.matmul %1, %0, %cst {dimension_numbers = #tpu.dot_dimension_numbers<[1], [0], [0], [1], [0, 0, 1, 1], [], []>} : vector<32x4xf32>, vector<4x2xf32>, vector<32x2xf32> -> vector<32x2xf32>
    %c0_3 = arith.constant 0 : index
    %c0_4 = arith.constant 0 : index
    %3 = vector.load %arg3[%c0_3, %c0_4] : memref<32x1xf32, #tpu.memory_space<vmem>>, vector<32x1xf32>
    %4 = vector.broadcast %3 : vector<32x1xf32> to vector<32x2xf32>
    %5 = arith.addf %2, %4 : vector<32x2xf32>
    %cst_5 = arith.constant 0.000000e+00 : f32
    %6 = vector.broadcast %cst_5 : f32 to vector<32x2xf32>
    %7 = arith.maximumf %5, %6 : vector<32x2xf32>
    %c0_6 = arith.constant 0 : index
    %c0_7 = arith.constant 0 : index
    %8 = vector.load %arg4[%c0_6, %c0_7] : memref<4x32xf32, #tpu.memory_space<vmem>>, vector<4x32xf32>
    %cst_8 = arith.constant dense<0.000000e+00> : vector<4x2xf32>
    %9 = tpu.matmul %8, %7, %cst_8 {dimension_numbers = #tpu.dot_dimension_numbers<[1], [0], [0], [1], [0, 0, 1, 1], [], []>} : vector<4x32xf32>, vector<32x2xf32>, vector<4x2xf32> -> vector<4x2xf32>
    %c0_9 = arith.constant 0 : index
    %c0_10 = arith.constant 0 : index
    %10 = vector.load %arg5[%c0_9, %c0_10] : memref<4x1xf32, #tpu.memory_space<vmem>>, vector<4x1xf32>
    %11 = vector.broadcast %10 : vector<4x1xf32> to vector<4x2xf32>
    %12 = arith.addf %9, %11 : vector<4x2xf32>
    %13 = vector.extract_strided_slice %12 {offsets = [0, 0], sizes = [2, 2], strides = [1, 1]} : vector<4x2xf32> to vector<2x2xf32>
    %14 = vector.extract_strided_slice %12 {offsets = [2, 0], sizes = [2, 2], strides = [1, 1]} : vector<4x2xf32> to vector<2x2xf32>
    %15 = math.tanh %13 : vector<2x2xf32>
    %cst_11 = arith.constant 2.000000e+00 : f32
    %16 = vector.broadcast %cst_11 : f32 to vector<2x2xf32>
    %17 = arith.mulf %16, %15 : vector<2x2xf32>
    %c0_12 = arith.constant 0 : index
    %c0_13 = arith.constant 0 : index
    %18 = vector.load %arg6[%c0_12, %c0_13] : memref<2x2xf32, #tpu.memory_space<vmem>>, vector<2x2xf32>
    tpu.vector_store %arg6[%c0_12, %c0_13], %17 {strides = array<i32>} : memref<2x2xf32, #tpu.memory_space<vmem>>, vector<2x2xf32>,
    %cst_14 = arith.constant 0.000000e+00 : f32
    %19 = vector.broadcast %cst_14 : f32 to vector<2x2xf32>
    %20 = arith.maximumf %14, %19 : vector<2x2xf32>
    %21 = math.absf %14 : vector<2x2xf32>
    %cst_15 = arith.constant 0.000000e+00 : f32
    %22 = vector.broadcast %cst_15 : f32 to vector<2x2xf32>
    %23 = arith.subf %22, %21 : vector<2x2xf32>
    %24 = math.exp %23 : vector<2x2xf32>
    %25 = math.log1p %24 : vector<2x2xf32>
    %26 = arith.addf %20, %25 : vector<2x2xf32>
    %c0_16 = arith.constant 0 : index
    %c0_17 = arith.constant 0 : index
    %27 = vector.load %arg7[%c0_16, %c0_17] : memref<2x2xf32, #tpu.memory_space<vmem>>, vector<2x2xf32>
    tpu.vector_store %arg7[%c0_16, %c0_17], %26 {strides = array<i32>} : memref<2x2xf32, #tpu.memory_space<vmem>>, vector<2x2xf32>,
    return
  }
  func.func @transform_0(%arg0: i32) -> (i32, i32) {
    %c0_i32 = arith.constant 0 : i32
    %c0_i32_0 = arith.constant 0 : i32
    return %c0_i32, %arg0 : i32, i32
  }
  func.func @transform_1(%arg0: i32) -> (i32, i32) {
    %c0_i32 = arith.constant 0 : i32
    %c0_i32_0 = arith.constant 0 : i32
    %c0_i32_1 = arith.constant 0 : i32
    return %c0_i32, %c0_i32_0 : i32, i32
  }
  func.func @transform_2(%arg0: i32) -> (i32, i32) {
    %c0_i32 = arith.constant 0 : i32
    %c0_i32_0 = arith.constant 0 : i32
    %c0_i32_1 = arith.constant 0 : i32
    return %c0_i32, %c0_i32_0 : i32, i32
  }
  func.func @transform_3(%arg0: i32) -> (i32, i32) {
    %c0_i32 = arith.constant 0 : i32
    %c0_i32_0 = arith.constant 0 : i32
    %c0_i32_1 = arith.constant 0 : i32
    return %c0_i32, %c0_i32_0 : i32, i32
  }
  func.func @transform_4(%arg0: i32) -> (i32, i32) {
    %c0_i32 = arith.constant 0 : i32
    %c0_i32_0 = arith.constant 0 : i32
    %c0_i32_1 = arith.constant 0 : i32
    return %c0_i32, %c0_i32_0 : i32, i32
  }
  func.func @transform_5(%arg0: i32) -> (i32, i32) {
    %c0_i32 = arith.constant 0 : i32
    %c0_i32_0 = arith.constant 0 : i32
    return %c0_i32, %arg0 : i32, i32
  }
  func.func @transform_6(%arg0: i32) -> (i32, i32) {
    %c0_i32 = arith.constant 0 : i32
    %c0_i32_0 = arith.constant 0 : i32
    return %c0_i32, %arg0 : i32, i32
  }
}

</mosaic_0001>

<bundles_post_ra>
// kernel: policy_net_continuous.1
= control target key start
LH: loop header
LB: loop body
LE: loop exit
PB: predicated region body
PF: predicated region fallthrough
CT: control target
= control target key end

     0   :  { %vm64_vm0 = vcmask 1043456   ;;  %vm51_vm1 = vcmask 31744   ;;  %v320_v3 = vmov 0   ;;  %v321_v11 = vmov 0.0|0.0   ;;  %s402_s0 = inlined_call_operand.vmem [shape: f32[4,2], index: 0, kind: input, shape index: {}]   ;;  %s403_s1 = inlined_call_operand.vmem [shape: f32[32,4], index: 1, kind: input, shape index: {}]   ;;  %s404_s2 = inlined_call_operand.vmem [shape: f32[32,1], index: 2, kind: input, shape index: {}]   ;;  %s405_s4 = inlined_call_operand.vmem [shape: f32[4,1], index: 4, kind: input, shape index: {}]   ;;  %s406_s3 = inlined_call_operand.vmem [shape: f32[4,32], index: 3, kind: input, shape index: {}]   ;;  %s407_s5 = inlined_call_operand.vmem [shape: f32[2,2], index: 5, kind: output, shape index: {0}]   ;;  %s408_s6 = inlined_call_operand.vmem [shape: f32[2,2], index: 6, kind: output, shape index: {1}]  }
   0x1   :  { %v22_v0 = vld [vmem:[%s402_s0] sm:$0xf]  ;;  %v24_v2 = vld [vmem:[%s403_s1 + $0x8] sm:$0xff]  ;;  %312 = vset.pattern.permute.xlu0 %v320_v3  ;;  %313 = vset.pattern.permute.xlu1 %v320_v3  ;;  %v25_v4 = vld [vmem:[%s403_s1 + $0x10] sm:$0xff]  ;;  %vm322_vm2 = vmmov 0   ;;  %v323_v12 = vmov 0.0  }
   0x2   :  { %v23_v1 = vld [vmem:[%s403_s1] sm:$0xff]  ;;  %283 = vmatprep.subr.msk.mxu0 %vm64_vm0, %v22_v0  ;;  %v29_v6 = vld [vmem:[%s404_s2 + $0x10] sm:$0xff]  ;;  %v28_v7 = vld [vmem:[%s404_s2 + $0x8] sm:$0xff]  ;;  %302 = vmatprep.subr.bf16.mxu1 %v321_v11  ;;  %vm164_vm3 = vcmask 261120   ;;  %vm240_vm4 = vcmask 9216   ;;  %vm257_vm6 = vcmask 11266  }
   0x3   :  { %285 = vmatprep.mubr.msk.f32.mxu0 %vm51_vm1, %v23_v1  ;;  %v27_v5 = vld [vmem:[%s404_s2] sm:$0xff]  ;;  %284 = vmatpush3.msk.msra.mxu0 %vm64_vm0, %v22_v0  ;;  %v26_v8 = vld [vmem:[%s403_s1 + $0x18] sm:$0xff] }
   0x4   :  { %33 = vperm.xlu0 %312, %v27_v5   ;;  %286 = vmatmul.mubr.msk.f32.vlgmr.msra.gmra.mrb[0].mxu0 %vm51_vm1, %v24_v2  ;;  %v30_v9 = vld [vmem:[%s404_s2 + $0x18] sm:$0xff]  ;;  %v158_v10 = vld [vmem:[%s405_s4] sm:$0xf] }
   0x5   :  { %43 = vperm.xlu1 %313, %v29_v6   ;;  %288 = vmatprep.mubr.msk.f32.mxu0 %vm51_vm1, %v25_v4  ;;  %v157_v31 = vld [vmem:[%s406_s3] sm:$0xf] }
   0x6   :  { %299 = vmatprep.mubr.msk.f32.mxu1 %vm322_vm2, %v323_v12 }
   0x8   :  { %38 = vperm.xlu0 %312, %v28_v7   ;;  %289 = vmatmul.mubr.msk.f32.gmra.mrb[2].mxu0 %vm51_vm1, %v26_v8 }
   0x9   :  { %48 = vperm.xlu1 %313, %v30_v9  }
   0xc   :  { %161 = vperm.xlu0 %312, %v158_v10  }
  0x83   :  { %v34_v13 = vpop.permute.xlu0 %33 }
  0x84   :  { %v44_v14 = vpop.permute.xlu1 %43 }
  0x87   :  { %v39_v15 = vpop.permute.xlu0 %38 }
  0x88   :  { %v49_v21 = vpop.permute.xlu1 %48 }
  0x8b   :  { %v162_v32 = vpop.permute.xlu0 %161 }
  0xd7   :  { %v287_v16 = vpop.f32.mrb[0].mxu0 }
  0xd8   :  { %v140_v17 = vadd.f32 %v287_v16, %v39_v15  ;;  %v134_v18 = vpop.f32.mrb[1].mxu0 }
  0xd9   :  { %v135_v19 = vadd.f32 %v134_v18, %v34_v13 }
  0xda   :  { %v154_v20 = vmax.f32 %v140_v17, 0.0 }
  0xdb   :  { %v153_v22 = vmax.f32 %v135_v19, 0.0  ;;  %v290_v23 = vpop.f32.mrb[2].mxu0 }
  0xdc   :  { %v150_v24 = vadd.f32 %v290_v23, %v49_v21  ;;  %v144_v25 = vpop.f32.mrb[3].mxu0 }
  0xdd   :  { %v145_v26 = vadd.f32 %v144_v25, %v44_v14  ;;  %v303_v27 = vpack.c.bf16 %v154_v20, %v153_v22 }
  0xde   :  { %v156_v28 = vmax.f32 %v150_v24, 0.0 }
  0xdf   :  { %v155_v29 = vmax.f32 %v145_v26, 0.0  ;;  %304 = vmatpush3.bf16.msra.mxu1 %v303_v27 }
  0xe0   :  { %305 = vmatprep.subr.bf16.mxu1 %v321_v11 }
  0xe1   :  { %v306_v30 = vpack.c.bf16 %v156_v28, %v155_v29 }
  0xe3   :  { %307 = vmatpush3.bf16.msra.mxu1 %v306_v30 }
  0xe6   :  { %300 = vmatmul.mubr.msk.f32.vlgmr.msra.gmra.mrb[0].mxu1 %vm164_vm3, %v157_v31 }
 0x1b9   :  { %v234_v33 = vpop.f32.mrb[0].mxu1 }
 0x1ba   :  { %v235_v34 = vadd.f32 %v234_v33, %v162_v32  ;;  %v301_v35 = vpop.f32.mrb[1].mxu1 }
 0x1bc   :  { %314 = vtanh.f32 %v235_v34  ;;  %v243_v36 = vand.u32 2147483647, %v235_v34  ;;  %v242_v49 = vmax.f32 %v235_v34, 0.0 }
 0x1be   :  { %v244_v37 = vsub.f32 0.0, %v243_v36 }
 0x1c0   :  { %v245_v38 = vmul.f32 1.442695, %v244_v37 }
 0x1c2   :  { %316 = vpow2.f32 %v245_v38 }
 0x1c6   :  { %v315_v39 = vpop.eup %314 }
 0x1c7   :  { %v239_v40 = vmul.f32 2.0, %v315_v39 }
 0x1c9   :  { %241 = vst.msk [vmem:[%s407_s5] sm:$0x3] %vm240_vm4, %v239_v40 }
 0x1cc   :  { %v317_v41 = vpop.eup %316 }
 0x1cd   :  { %v247_v42 = vadd.f32 1.0, %v317_v41  ;;  %v250_v43 = vmul.f32 -0.5, %v317_v41  ;;  %v253_v45 = vand.u32 2147483647, %v317_v41 }
 0x1cf   :  { %318 = vlog2.f32 %v247_v42  ;;  %v251_v44 = vadd.f32 1.0, %v250_v43  ;;  %vm254_vm5 = vcmp.lt.f32.partialorder %v253_v45, 0.0004427343 }
 0x1d1   :  { %v252_v48 = vmul.f32 %v317_v41, %v251_v44 }
 0x1d9   :  { %v319_v46 = vpop.eup %318 }
 0x1da   :  { %v249_v47 = vmul.f32 0.6931472, %v319_v46 }
 0x1dc   :  { %v255_v50 = vsel %vm254_vm5, %v252_v48, %v249_v47 }
 0x1dd   :  { %v256_v51 = vadd.f32 %v255_v50, %v242_v49 }
 0x1df   :  { %258 = vst.msk [vmem:[%s408_s6 - $0x2] sm:$0xc] %vm257_vm6, %v256_v51 }

</bundles_post_ra>
